<compile_context>
chip_gen: v7x
topology: tpu7x:2x2x1
jax: 0.10.0
libtpu: 0.0.40
codegen_flags: <defaults>
</compile_context>

<pallas_src>
import functools

import jax
import jax.numpy as jnp
from jax.experimental import pallas as pl
from jax.experimental.pallas import tpu as pltpu


# ----------------------------- Pallas kernel -------------------------------

def _temporal_gate_kernel(x_ref, selt_ref, mt_ref, b_ref, o_ref, *, bn, q, inv_q):
    # x block   : (bn, c*s, hw_blk)   lane-dense activations
    # selt block: (p_blk, hw_blk)     0/1 lane-selection (picks lane b*q per bin)
    # mt block  : (c*s, 3*so)         banded conv weights, prefix-summed branches
    # b block   : (1, 3*so)           prefix-summed biases (lane-dense row)
    # out block : (bn, p_blk, 3*so)   lane-dense store (last dim >= 128)
    selt = selt_ref[...]
    mt = mt_ref[...]
    bias = b_ref[...]

    for bi in range(bn):                                   # static, small unroll
        xb = x_ref[bi].astype(jnp.float32)                 # (c*s, hw_blk), dense lanes

        # Chunk-of-q mean+max on the VPU: q-1 shifted adds/maxes over dense
        # vregs.  After the loop, lane j = b*q holds the full chunk-b result.
        acc = xb
        mx = xb
        for k in range(1, q):
            sh = jnp.roll(xb, -k, axis=-1)                  # sh[:, j] = xb[:, j+k]
            acc = acc + sh
            mx = jnp.maximum(mx, sh)
        pooled = acc * inv_q + mx                           # valid at lanes b*q

        # Downsample (pick lane b*q per bin) on the idle MXU:
        #   hppT[b, r] = pooled[r, b*q]           -> (p_blk, c*s)
        hppt = jax.lax.dot_general(
            selt, pooled, (((1,), (1,)), ((), ())),
            preferred_element_type=jnp.float32)
        # All three dilated temporal convs (prefix sums + bias already folded
        # into the weights) as one plain matmul, already transposed so the
        # store is lane-dense:   bigT = hppT @ M_allT  -> (p_blk, 3*so)
        bigt = jax.lax.dot_general(
            hppt, mt, (((1,), (0,)), ((), ())),
            preferred_element_type=jnp.float32)
        o_ref[bi] = (bigt + bias).astype(o_ref.dtype)


# ------------------------ parameter preparation -----------------------------

def prepare_temporal_gate_params(params, *, in_channels, out_channels, s, h, w,
                                 bin_num=64):
    """Build the banded weight matrix / bias row / lane-selection matrix once
    (outside the per-forward path)."""
    c, oc, p = in_channels, out_channels, bin_num
    hw = h * w
    assert hw % p == 0, "h*w must be divisible by the bin count"
    q = hw // p
    so = s * oc

    def temporal_matrix(wd, d):
        # wd: (out_c, in_c, 3) -> (so, c*s); row = t*out_c + o, col = ci*s + t'.
        wd = wd.astype(jnp.float32)
        kt = wd.shape[-1]
        tp = jnp.arange(s)[:, None] + d * (jnp.arange(kt) - (kt // 2))[None, :]
        onehot = (tp[:, :, None] == jnp.arange(s)[None, None, :]).astype(jnp.float32)
        a = jnp.einsum("ock,tku->tocu", wd, onehot)          # (s, out_c, in_c, s)
        return a.reshape(so, c * s)

    m1 = temporal_matrix(params["w1"], 1)
    m2 = temporal_matrix(params["w2"], 2)
    m4 = temporal_matrix(params["w4"], 4)
    # Fold the t_f / t_s / t_l prefix sums into the weights (all linear).
    m_all = jnp.concatenate([m1, m1 + m2, m1 + m2 + m4], axis=0)   # (3*so, c*s)
    m_allT = m_all.T                                               # (c*s, 3*so)

    def bias_row(bd):
        return jnp.tile(bd.astype(jnp.float32), (s,))              # row t*oc+o -> b[o]

    b1, b2, b4 = bias_row(params["b1"]), bias_row(params["b2"]), bias_row(params["b4"])
    b_all = jnp.concatenate([b1, b1 + b2, b1 + b2 + b4]).reshape(1, 3 * so)

    # Lane-selection matrix: picks lane b*q (where the chunk-b pooled value lands).
    selT = (jnp.arange(hw)[None, :] == (jnp.arange(p) * q)[:, None]
            ).astype(jnp.float32)                                  # (p, hw)

    return {"m_allT": m_allT, "b_all": b_all, "selT": selT}


# ------------------------------ wrapper -------------------------------------

def temporal_gate_forward(x, prepared, *, out_channels, bin_num=64):
    """x: (n, c, s, h, w) -> (n, s, out_channels, bin_num, 3).
    Accepts f32 or bf16 x; pooling and matmuls accumulate in f32."""
    n, c, s, h, w = x.shape
    p = bin_num
    hw = h * w
    assert hw % p == 0, "h*w must be divisible by the bin count"
    q = hw // p
    cs = c * s
    so = s * out_channels
    tso = 3 * so

    # Free, contiguous, lane-dense view of the input.
    x_r = x.reshape(n, cs, hw)

    # --- batch blocking: amortize per-step overhead, keep >=2 parallel units.
    in_bytes = cs * hw * x.dtype.itemsize
    bn = max(1, min(n, (2 << 20) // max(in_bytes, 1)))      # ~2 MiB per block
    if n > 1 and bn >= n:
        bn = max(1, n // 2)                                  # keep >=2 grid steps
    while n % bn:
        bn -= 1
    steps = n // bn
    # If the batch axis alone gives <2 units, split the bin axis too (v7x 2 TCs).
    pb = 2 if (steps < 2 and p % 16 == 0 and (hw // 2) % 128 == 0) else 1
    p_blk, hw_blk = p // pb, hw // pb

    kern = functools.partial(_temporal_gate_kernel, bn=bn, q=q, inv_q=1.0 / q)
    grid_spec = pltpu.PrefetchScalarGridSpec(
        num_scalar_prefetch=0,
        grid=(steps, pb),
        in_specs=[
            pl.BlockSpec((bn, cs, hw_blk), lambda i, j: (i, 0, j)),
            pl.BlockSpec((p_blk, hw_blk), lambda i, j: (j, j)),   # block-diagonal
            pl.BlockSpec((cs, tso), lambda i, j: (0, 0)),
            pl.BlockSpec((1, tso), lambda i, j: (0, 0)),
        ],
        out_specs=pl.BlockSpec((bn, p_blk, tso), lambda i, j: (i, j, 0)),
    )
    y_raw = pl.pallas_call(
        kern,
        out_shape=jax.ShapeDtypeStruct((n, p, tso), x.dtype),
        grid_spec=grid_spec,
        compiler_params=pltpu.CompilerParams(
            dimension_semantics=("parallel", "parallel")),
    )(x_r, prepared["selT"], prepared["m_allT"], prepared["b_all"])

    # (n, p, 3, s, out_c) -> (n, s, out_c, p, 3): single wrapper layout pass
    # required by the PyTorch output format.
    return jnp.transpose(y_raw.reshape(n, p, 3, s, out_channels), (0, 3, 4, 1, 2))


# --------------------------------- main --------------------------------------

if __name__ == "__main__":
    N, C_IN, C_OUT, S, H, W = 2, 4, 8, 8, 16, 16
    BIN = 64

    key = jax.random.PRNGKey(0)
    kx, k1, k2, k3, k4, k5, k6 = jax.random.split(key, 7)
    x = jax.random.normal(kx, (N, C_IN, S, H, W), jnp.float32)
    params = {
        "w1": jax.random.normal(k1, (C_OUT, C_IN, 3), jnp.float32) * 0.1,
        "b1": jax.random.normal(k2, (C_OUT,), jnp.float32) * 0.1,
        "w2": jax.random.normal(k3, (C_OUT, C_IN, 3), jnp.float32) * 0.1,
        "b2": jax.random.normal(k4, (C_OUT,), jnp.float32) * 0.1,
        "w4": jax.random.normal(k5, (C_OUT, C_IN, 3), jnp.float32) * 0.1,
        "b4": jax.random.normal(k6, (C_OUT,), jnp.float32) * 0.1,
    }

    # Hoisted out of the per-forward path (computed once).
    prepared = prepare_temporal_gate_params(
        params, in_channels=C_IN, out_channels=C_OUT, s=S, h=H, w=W, bin_num=BIN)

    fwd = jax.jit(functools.partial(temporal_gate_forward,
                                    out_channels=C_OUT, bin_num=BIN))
    y = fwd(x, prepared)
    jax.block_until_ready(y)

    # ---- reference (pure JAX, mirrors the PyTorch forward exactly) ----------
    xp = jnp.transpose(x, (0, 2, 1, 3, 4)).reshape(N * S, C_IN, H, W)
    z = xp.reshape(N * S, C_IN, BIN, -1)
    z = z.mean(-1) + z.max(-1)                                   # (N*S, C, BIN)
    xc = z.reshape(N, S, C_IN, BIN).transpose(0, 2, 1, 3)        # (N, C, S, BIN)

    def ref_conv(xin, wd, bd, d):
        xpad = jnp.pad(xin, ((0, 0), (0, 0), (d, d), (0, 0)))
        out = jnp.zeros((N, C_OUT, S, BIN), jnp.float32) + bd[None, :, None, None]
        for k in range(3):
            out = out + jnp.einsum("oc,ncsp->nosp", wd[:, :, k],
                                   xpad[:, :, k * d:k * d + S, :])
        return out

    c1 = ref_conv(xc, params["w1"], params["b1"], 1)
    c2 = ref_conv(xc, params["w2"], params["b2"], 2)
    c4 = ref_conv(xc, params["w4"], params["b4"], 4)
    perm = lambda t: jnp.transpose(t, (0, 2, 1, 3))[..., None]
    tf = perm(c1)
    ts = perm(c2) + tf
    tl = perm(c4) + ts
    ref = jnp.concatenate([tf, ts, tl], axis=-1)                 # (N,S,Co,BIN,3)

    assert y.shape == (N, S, C_OUT, BIN, 3)
    assert jnp.allclose(y, ref, atol=1e-4, rtol=1e-4)
    print("KERNEL_OK")
</pallas_src>

<mosaic_0001>
module attributes {stable_mosaic.version = 11 : i64} {
  func.func @_temporal_gate_kernel(%arg0: i32, %arg1: i32, %arg2: memref<1x32x256xf32, #tpu.memory_space<vmem>>, %arg3: memref<64x256xf32, #tpu.memory_space<vmem>>, %arg4: memref<32x192xf32, #tpu.memory_space<vmem>>, %arg5: memref<1x192xf32, #tpu.memory_space<vmem>>, %arg6: memref<1x64x192xf32, #tpu.memory_space<vmem>>) attributes {dimension_semantics = [#tpu.dimension_semantics<parallel>, #tpu.dimension_semantics<parallel>], iteration_bounds = array<i64: 2, 1>, scalar_prefetch = 0 : i64, scratch_operands = 0 : i64, tpu.core_type = #tpu.core_type<tc>, window_params = [{transform_indices = @transform_0, window_bounds = array<i64: 1, 32, 256>}, {transform_indices = @transform_1, window_bounds = array<i64: 64, 256>}, {pipeline_mode = #tpu.pipeline_mode<synchronous>, transform_indices = @transform_2, window_bounds = array<i64: 32, 192>}, {pipeline_mode = #tpu.pipeline_mode<synchronous>, transform_indices = @transform_3, window_bounds = array<i64: 1, 192>}, {transform_indices = @transform_4, window_bounds = array<i64: 1, 64, 192>}]} {
    %c0 = arith.constant 0 : index
    %c0_0 = arith.constant 0 : index
    %0 = vector.load %arg3[%c0, %c0_0] : memref<64x256xf32, #tpu.memory_space<vmem>>, vector<64x256xf32>
    %c0_1 = arith.constant 0 : index
    %c0_2 = arith.constant 0 : index
    %1 = vector.load %arg4[%c0_1, %c0_2] : memref<32x192xf32, #tpu.memory_space<vmem>>, vector<32x192xf32>
    %c0_3 = arith.constant 0 : index
    %c0_4 = arith.constant 0 : index
    %2 = vector.load %arg5[%c0_3, %c0_4] : memref<1x192xf32, #tpu.memory_space<vmem>>, vector<1x192xf32>
    %c0_5 = arith.constant 0 : index
    %c0_6 = arith.constant 0 : index
    %c0_7 = arith.constant 0 : index
    %3 = vector.load %arg2[%c0_5, %c0_6, %c0_7] : memref<1x32x256xf32, #tpu.memory_space<vmem>>, vector<1x32x256xf32>
    %4 = vector.shape_cast %3 : vector<1x32x256xf32> to vector<32x256xf32>
    %5 = vector.extract_strided_slice %4 {offsets = [0, 1], sizes = [32, 255], strides = [1, 1]} : vector<32x256xf32> to vector<32x255xf32>
    %6 = vector.extract_strided_slice %4 {offsets = [0, 0], sizes = [32, 1], strides = [1, 1]} : vector<32x256xf32> to vector<32x1xf32>
    %7 = tpu.concatenate %5, %6 in 1 : vector<32x255xf32>, vector<32x1xf32> -> vector<32x256xf32>
    %8 = arith.addf %4, %7 : vector<32x256xf32>
    %9 = arith.maximumf %4, %7 : vector<32x256xf32>
    %10 = vector.extract_strided_slice %4 {offsets = [0, 2], sizes = [32, 254], strides = [1, 1]} : vector<32x256xf32> to vector<32x254xf32>
    %11 = vector.extract_strided_slice %4 {offsets = [0, 0], sizes = [32, 2], strides = [1, 1]} : vector<32x256xf32> to vector<32x2xf32>
    %12 = tpu.concatenate %10, %11 in 1 : vector<32x254xf32>, vector<32x2xf32> -> vector<32x256xf32>
    %13 = arith.addf %8, %12 : vector<32x256xf32>
    %14 = arith.maximumf %9, %12 : vector<32x256xf32>
    %15 = vector.extract_strided_slice %4 {offsets = [0, 3], sizes = [32, 253], strides = [1, 1]} : vector<32x256xf32> to vector<32x253xf32>
    %16 = vector.extract_strided_slice %4 {offsets = [0, 0], sizes = [32, 3], strides = [1, 1]} : vector<32x256xf32> to vector<32x3xf32>
    %17 = tpu.concatenate %15, %16 in 1 : vector<32x253xf32>, vector<32x3xf32> -> vector<32x256xf32>
    %18 = arith.addf %13, %17 : vector<32x256xf32>
    %19 = arith.maximumf %14, %17 : vector<32x256xf32>
    %cst = arith.constant 2.500000e-01 : f32
    %20 = vector.broadcast %cst : f32 to vector<32x256xf32>
    %21 = arith.mulf %18, %20 : vector<32x256xf32>
    %22 = arith.addf %21, %19 : vector<32x256xf32>
    %cst_8 = arith.constant dense<0.000000e+00> : vector<64x32xf32>
    %23 = tpu.matmul %0, %22, %cst_8 {dimension_numbers = #tpu.dot_dimension_numbers<[1], [1], [0], [0], [0, 0, 1, 0], [], []>} : vector<64x256xf32>, vector<32x256xf32>, vector<64x32xf32> -> vector<64x32xf32>
    %cst_9 = arith.constant dense<0.000000e+00> : vector<64x192xf32>
    %24 = tpu.matmul %23, %1, %cst_9 {dimension_numbers = #tpu.dot_dimension_numbers<[1], [0], [0], [1], [0, 0, 1, 1], [], []>} : vector<64x32xf32>, vector<32x192xf32>, vector<64x192xf32> -> vector<64x192xf32>
    %25 = vector.broadcast %2 : vector<1x192xf32> to vector<64x192xf32>
    %26 = arith.addf %24, %25 : vector<64x192xf32>
    %c0_10 = arith.constant 0 : index
    %c0_11 = arith.constant 0 : index
    %c0_12 = arith.constant 0 : index
    %27 = vector.load %arg6[%c0_10, %c0_11, %c0_12] : memref<1x64x192xf32, #tpu.memory_space<vmem>>, vector<1x64x192xf32>
    %28 = vector.shape_cast %27 : vector<1x64x192xf32> to vector<64x192xf32>
    %29 = vector.shape_cast %26 : vector<64x192xf32> to vector<1x64x192xf32>
    tpu.vector_store %arg6[%c0_10, %c0_11, %c0_12], %29 {strides = array<i32>} : memref<1x64x192xf32, #tpu.memory_space<vmem>>, vector<1x64x192xf32>,
    return
  }
  func.func @transform_0(%arg0: i32, %arg1: i32) -> (i32, i32, i32) {
    %c0_i32 = arith.constant 0 : i32
    %c0_i32_0 = arith.constant 0 : i32
    return %arg0, %c0_i32, %arg1 : i32, i32, i32
  }
  func.func @transform_1(%arg0: i32, %arg1: i32) -> (i32, i32) {
    %c0_i32 = arith.constant 0 : i32
    return %arg1, %arg1 : i32, i32
  }
  func.func @transform_2(%arg0: i32, %arg1: i32) -> (i32, i32) {
    %c0_i32 = arith.constant 0 : i32
    %c0_i32_0 = arith.constant 0 : i32
    %c0_i32_1 = arith.constant 0 : i32
    return %c0_i32, %c0_i32_0 : i32, i32
  }
  func.func @transform_3(%arg0: i32, %arg1: i32) -> (i32, i32) {
    %c0_i32 = arith.constant 0 : i32
    %c0_i32_0 = arith.constant 0 : i32
    %c0_i32_1 = arith.constant 0 : i32
    return %c0_i32, %c0_i32_0 : i32, i32
  }
  func.func @transform_4(%arg0: i32, %arg1: i32) -> (i32, i32, i32) {
    %c0_i32 = arith.constant 0 : i32
    %c0_i32_0 = arith.constant 0 : i32
    return %arg0, %arg1, %c0_i32 : i32, i32, i32
  }
}

</mosaic_0001>

<bundles_post_ra>
// kernel: temporal_gate_forward.1
= control target key start
LH: loop header
LB: loop body
LE: loop exit
PB: predicated region body
PF: predicated region fallthrough
CT: control target
= control target key end

     0   :  { %s1000_s15 = smov 0   ;;  %s1002_s16 = smov 0   ;;  %s1226_s0 = inlined_call_operand.vmem [shape: f32[2,32,256], index: 0, kind: input, shape index: {}]   ;;  %s1227_s1 = inlined_call_operand.vmem [shape: f32[64,256], index: 1, kind: input, shape index: {}]   ;;  %s1228_s2 = inlined_call_operand.vmem [shape: f32[32,192], index: 2, kind: input, shape index: {}]   ;;  %s1229_s3 = inlined_call_operand.vmem [shape: f32[1,192], index: 3, kind: input, shape index: {}]   ;;  %s1230_s4 = inlined_call_operand.vmem [shape: f32[2,64,192], index: 4, kind: output, shape index: {}]  }
   0x1   :  { %s1004_s17 = smov 0  }
   0x2 LB: > { %s26_s18 = sadd.s32 1, %s965_s16  ;;  %p886_p0 = scmp.ge.s32.totalorder %s969_s17, 1  ;;  %s969_s17 = sphi %s1004_s17, %s14_s17   ;;  %s965_s16 = sphi %s1002_s16, %s1232_s16   ;;  %s961_s15 = sphi %s1000_s15, %s1231_s15  }
   0x3   : > { %p28_p1 = scmp.ge.s32.totalorder %s26_s18, 2  ;;  %p202_p2 = scmp.lt.s32.totalorder %s969_s17, 3 }
   0x5   : > { %s1234_s18 = smov (%p28_p1, %s26_s18), 0  ;;  %p203_p3 = pnand %p886_p0, %p202_p2 }
   0x6   : > { %p248_p4 = scmp.lt.s32.totalorder (!%p203_p3), %s961_s15, 1  ;;  %s971_s23 = smov (!%p203_p3), 127   ;;  %v281_v8 = vld [vmem:[%s1227_s1 + $0x8] sm:$0xff] (!%p203_p3)  ;;  %v299_v10 = vld [vmem:[%s1228_s2 + $0x18] sm:$0xff] (!%p203_p3)  ;;  %v296_v11 = vld [vmem:[%s1228_s2] sm:$0xff] (!%p203_p3)  ;;  %vm337_vm0 = vcmask (!%p203_p3), 1039360  }
   0x7   : > { %206 = sbr.rel (%p203_p3) target bundleno = 650 (0x28a), region = 36  ;;  %s972_s24 = smov (!%p203_p3), 126   ;;  %560 = vmatprep.mubr.f32.mxu0 (!%p203_p3), %v281_v8  ;;  %v297_v9 = vld [vmem:[%s1228_s2 + $0x8] sm:$0xff] (!%p203_p3)  ;;  %v298_v13 = vld [vmem:[%s1228_s2 + $0x10] sm:$0xff] (!%p203_p3)  ;;  %v303_v15 = vld [vmem:[%s1228_s2 + $0x38] sm:$0xff] (!%p203_p3)  ;;  %vm390_vm1 = vcmask (!%p203_p3), 1031168  }
   0x8   : > { %s973_s25 = smov (!%p203_p3), 125   ;;  %v911_v12 = vpack.c.bf16 (!%p203_p3), %v299_v10, %v297_v9  ;;  %v301_v14 = vld [vmem:[%s1228_s2 + $0x28] sm:$0xff] (!%p203_p3)  ;;  %v913_v16 = vpack.c.bf16 (!%p203_p3), %v298_v13, %v296_v11  ;;  %v300_v18 = vld [vmem:[%s1228_s2 + $0x20] sm:$0xff] (!%p203_p3)  ;;  %v302_v19 = vld [vmem:[%s1228_s2 + $0x30] sm:$0xff] (!%p203_p3)  ;;  %vm443_vm2 = vcmask (!%p203_p3), 1022976   ;;  %vm612_vm3 = vcmask (!%p203_p3), 261120  }
   0x9   : > { %v915_v17 = vpack.c.bf16 (!%p203_p3), %v303_v15, %v301_v14  ;;  %v917_v20 = vpack.c.bf16 (!%p203_p3), %v302_v19, %v300_v18  ;;  %vm751_vm4 = vcmask (!%p203_p3), 523264  }
   0xa   : > { %912 = vmatprep.subr.bf16.mxu1 (!%p203_p3), %v911_v12 }
   0xb   : > { %914 = vmatpush1.bf16.msra.mxu1 (!%p203_p3), %v913_v16 }
   0xc   : > { %916 = vmatprep.subr.bf16.mxu1 (!%p203_p3), %v915_v17 }
   0xe   : > { %s1236_s15 = smov (!%p248_p4, %s961_s15), 1 }
   0xf   : > { %s901_s19 = sshll.u32 %s1236_s15, 6  ;;  %918 = vmatpush1.bf16.msra.mxu1 %v917_v20  ;;  %s902_s6 = sshll.u32 %s1236_s15, 7 }
  0x10   : > { %s255_s22 = scalar_lea.vmem %s1226_s0, %s901_s19  ;;  %s1191_s9 = scalar_lea.vmem %s1230_s4, %s902_s6 }
  0x11   : > { %v1024_v0 = vld [vmem:[%s255_s22 + $0x10] sm:$0xff]  ;;  %v1026_v1 = vld [vmem:[%s255_s22] sm:$0xff]  ;;  %v1030_v2 = vld [vmem:[%s255_s22 + $0x18] sm:$0xff] }
  0x12   : > { %325 = vrot.lane.b32.xlu1 %v1024_v0, %s971_s23  ;;  %321 = vrot.lane.b32.xlu0 %v1026_v1, %s971_s23  ;;  %v1032_v3 = vld [vmem:[%s255_s22 + $0x8] sm:$0xff]  ;;  %v1046_v5 = vld [vmem:[%s255_s22 + $0x20] sm:$0xff] }
  0x13   : > { %v1044_v4 = vld [vmem:[%s255_s22 + $0x28] sm:$0xff]  ;;  %v1050_v6 = vld [vmem:[%s255_s22 + $0x38] sm:$0xff]  ;;  %v1052_v7 = vld [vmem:[%s255_s22 + $0x30] sm:$0xff] }
  0x16   : > { %327 = vrot.lane.b32.xlu1 %v1030_v2, %s971_s23  ;;  %323 = vrot.lane.b32.xlu0 %v1032_v3, %s971_s23 }
  0x1a   : > { %376 = vrot.lane.b32.xlu1 %v1032_v3, %s972_s24  ;;  %374 = vrot.lane.b32.xlu0 %v1026_v1, %s972_s24 }
  0x1e   : > { %380 = vrot.lane.b32.xlu1 %v1030_v2, %s972_s24  ;;  %378 = vrot.lane.b32.xlu0 %v1024_v0, %s972_s24 }
  0x22   : > { %429 = vrot.lane.b32.xlu1 %v1032_v3, %s973_s25  ;;  %427 = vrot.lane.b32.xlu0 %v1026_v1, %s973_s25 }
  0x26   : > { %433 = vrot.lane.b32.xlu1 %v1030_v2, %s973_s25  ;;  %431 = vrot.lane.b32.xlu0 %v1024_v0, %s973_s25 }
  0x2a   : > { %331 = vrot.lane.b32.xlu1 %v1044_v4, %s971_s23  ;;  %329 = vrot.lane.b32.xlu0 %v1046_v5, %s971_s23 }
  0x2e   : > { %335 = vrot.lane.b32.xlu1 %v1050_v6, %s971_s23  ;;  %333 = vrot.lane.b32.xlu0 %v1052_v7, %s971_s23 }
  0x32   : > { %384 = vrot.lane.b32.xlu1 %v1044_v4, %s972_s24  ;;  %382 = vrot.lane.b32.xlu0 %v1046_v5, %s972_s24 }
  0x36   : > { %388 = vrot.lane.b32.xlu1 %v1050_v6, %s972_s24  ;;  %386 = vrot.lane.b32.xlu0 %v1052_v7, %s972_s24 }
  0x3a   : > { %437 = vrot.lane.b32.xlu1 %v1044_v4, %s973_s25  ;;  %435 = vrot.lane.b32.xlu0 %v1046_v5, %s973_s25 }
  0x3e   : > { %441 = vrot.lane.b32.xlu1 %v1050_v6, %s973_s25  ;;  %439 = vrot.lane.b32.xlu0 %v1052_v7, %s973_s25 }
  0x84   : > { %v326_v21 = vpop.permute.xlu1 %325  ;;  %v322_v22 = vpop.permute.xlu0 %321 }
  0x88   : > { %v328_v23 = vpop.permute.xlu1 %327  ;;  %v324_v24 = vpop.permute.xlu0 %323 }
  0x89   : > { %v338_v27 = vsel %vm337_vm0, %v322_v22, %v324_v24  ;;  %v354_v28 = vsel %vm337_vm0, %v324_v24, %v322_v22  ;;  %v339_v35 = vsel %vm337_vm0, %v326_v21, %v328_v23  ;;  %v355_v36 = vsel %vm337_vm0, %v328_v23, %v326_v21 }
  0x8a   : > { %v358_v33 = vadd.f32 %v338_v27, %v1026_v1  ;;  %v359_v34 = vadd.f32 %v354_v28, %v1032_v3  ;;  %v360_v45 = vadd.f32 %v339_v35, %v1024_v0  ;;  %v361_v46 = vadd.f32 %v355_v36, %v1030_v2 }
  0x8b   : > { %v366_v49 = vmax.f32 %v1026_v1, %v338_v27  ;;  %v367_v50 = vmax.f32 %v1032_v3, %v354_v28  ;;  %v368_v55 = vmax.f32 %v1024_v0, %v339_v35  ;;  %v369_v56 = vmax.f32 %v1030_v2, %v355_v36 }
  0x8c   : > { %v377_v25 = vpop.permute.xlu1 %376  ;;  %v375_v26 = vpop.permute.xlu0 %374 }
  0x8d   : > { %v391_v31 = vsel %vm390_vm1, %v375_v26, %v377_v25  ;;  %v407_v32 = vsel %vm390_vm1, %v377_v25, %v375_v26 }
  0x8e   : > { %v411_v37 = vadd.f32 %v391_v31, %v358_v33  ;;  %v412_v38 = vadd.f32 %v407_v32, %v359_v34  ;;  %v419_v59 = vmax.f32 %v366_v49, %v391_v31  ;;  %v420_v60 = vmax.f32 %v367_v50, %v407_v32 }
  0x90   : > { %v381_v29 = vpop.permute.xlu1 %380  ;;  %v379_v30 = vpop.permute.xlu0 %378 }
  0x91   : > { %v392_v41 = vsel %vm390_vm1, %v379_v30, %v381_v29  ;;  %v408_v42 = vsel %vm390_vm1, %v381_v29, %v379_v30 }
  0x92   : > { %v413_v51 = vadd.f32 %v392_v41, %v360_v45  ;;  %v414_v52 = vadd.f32 %v408_v42, %v361_v46  ;;  %v421_v63 = vmax.f32 %v368_v55, %v392_v41  ;;  %v422_v1 = vmax.f32 %v369_v56, %v408_v42 }
  0x94   : > { %v430_v39 = vpop.permute.xlu1 %429  ;;  %v428_v40 = vpop.permute.xlu0 %427 }
  0x95   : > { %v444_v43 = vsel %vm443_vm2, %v428_v40, %v430_v39  ;;  %v460_v44 = vsel %vm443_vm2, %v430_v39, %v428_v40 }
  0x96   : > { %v464_v47 = vadd.f32 %v444_v43, %v411_v37  ;;  %v465_v48 = vadd.f32 %v460_v44, %v412_v38  ;;  %v472_v13 = vmax.f32 %v419_v59, %v444_v43  ;;  %v473_v0 = vmax.f32 %v420_v60, %v460_v44 }
  0x98   : > { %v434_v53 = vpop.permute.xlu1 %433  ;;  %v432_v54 = vpop.permute.xlu0 %431  ;;  %v480_v8 = vmul.f32 0.25, %v464_v47  ;;  %v481_v3 = vmul.f32 0.25, %v465_v48 }
  0x99   : > { %v445_v57 = vsel %vm443_vm2, %v432_v54, %v434_v53  ;;  %v461_v58 = vsel %vm443_vm2, %v434_v53, %v432_v54 }
  0x9a   : > { %v466_v61 = vadd.f32 %v445_v57, %v413_v51  ;;  %v467_v62 = vadd.f32 %v461_v58, %v414_v52  ;;  %v474_v14 = vmax.f32 %v421_v63, %v445_v57  ;;  %v475_v2 = vmax.f32 %v422_v1, %v461_v58 }
  0x9b   : > { %v489_v15 = vadd.f32 %v481_v3, %v473_v0  ;;  %v488_v17 = vadd.f32 %v480_v8, %v472_v13 }
  0x9c   : > { %v482_v9 = vmul.f32 0.25, %v466_v61  ;;  %v483_v10 = vmul.f32 0.25, %v467_v62  ;;  %v332_v11 = vpop.permute.xlu1 %331  ;;  %v330_v12 = vpop.permute.xlu0 %329 }
  0x9d   : > { %v340_v25 = vsel %vm337_vm0, %v330_v12, %v332_v11  ;;  %v356_v26 = vsel %vm337_vm0, %v332_v11, %v330_v12 }
  0x9e   : > { %v491_v16 = vadd.f32 %v483_v10, %v475_v2  ;;  %v490_v18 = vadd.f32 %v482_v9, %v474_v14  ;;  %v362_v31 = vadd.f32 %v340_v25, %v1046_v5  ;;  %v363_v32 = vadd.f32 %v356_v26, %v1044_v4  ;;  %v280_v14 = vld [vmem:[%s1227_s1] sm:$0xff]  ;;  %v283_v2 = vld [vmem:[%s1227_s1 + $0x18] sm:$0xff] }
  0x9f   : > { %v370_v35 = vmax.f32 %v1046_v5, %v340_v25  ;;  %v371_v36 = vmax.f32 %v1044_v4, %v356_v26  ;;  %v292_v25 = vld [vmem:[%s1227_s1 + $0x60] sm:$0xff]  ;;  %v295_v26 = vld [vmem:[%s1227_s1 + $0x78] sm:$0xff] }
  0xa0   : > { %v336_v19 = vpop.permute.xlu1 %335  ;;  %v334_v20 = vpop.permute.xlu0 %333  ;;  %v903_v21 = vpack.c.bf16 %v491_v16, %v489_v15  ;;  %v905_v22 = vpack.c.bf16 %v490_v18, %v488_v17  ;;  %v282_v15 = vld [vmem:[%s1227_s1 + $0x10] sm:$0xff]  ;;  %v285_v16 = vld [vmem:[%s1227_s1 + $0x28] sm:$0xff]  ;;  %v284_v17 = vld [vmem:[%s1227_s1 + $0x20] sm:$0xff] }
  0xa1   : > { %v341_v33 = vsel %vm337_vm0, %v334_v20, %v336_v19  ;;  %v357_v34 = vsel %vm337_vm0, %v336_v19, %v334_v20  ;;  %v287_v18 = vld [vmem:[%s1227_s1 + $0x38] sm:$0xff]  ;;  %v286_v19 = vld [vmem:[%s1227_s1 + $0x30] sm:$0xff]  ;;  %v289_v20 = vld [vmem:[%s1227_s1 + $0x48] sm:$0xff] }
  0xa2   : > { %904 = vmatprep.subr.bf16.mxu0 %v903_v21  ;;  %v364_v45 = vadd.f32 %v341_v33, %v1052_v7  ;;  %v365_v46 = vadd.f32 %v357_v34, %v1050_v6  ;;  %v372_v4 = vmax.f32 %v1052_v7, %v341_v33  ;;  %v373_v48 = vmax.f32 %v1050_v6, %v357_v34  ;;  %v288_v21 = vld [vmem:[%s1227_s1 + $0x40] sm:$0xff] }
  0xa3   : > { %906 = vmatpush1.bf16.xpose.msra.mxu0 %v905_v22  ;;  %v291_v22 = vld [vmem:[%s1227_s1 + $0x58] sm:$0xff] }
  0xa4   : > { %v385_v23 = vpop.permute.xlu1 %384  ;;  %v383_v24 = vpop.permute.xlu0 %382 }
  0xa5   : > { %v393_v29 = vsel %vm390_vm1, %v383_v24, %v385_v23  ;;  %v409_v30 = vsel %vm390_vm1, %v385_v23, %v383_v24  ;;  %v290_v23 = vld [vmem:[%s1227_s1 + $0x50] sm:$0xff]  ;;  %v293_v24 = vld [vmem:[%s1227_s1 + $0x68] sm:$0xff] }
  0xa6   : > { %v415_v37 = vadd.f32 %v393_v29, %v362_v31  ;;  %v416_v38 = vadd.f32 %v409_v30, %v363_v32  ;;  %v423_v49 = vmax.f32 %v370_v35, %v393_v29  ;;  %v424_v50 = vmax.f32 %v371_v36, %v409_v30 }
  0xa8   : > { %v389_v27 = vpop.permute.xlu1 %388  ;;  %v387_v28 = vpop.permute.xlu0 %386 }
  0xa9   : > { %v394_v41 = vsel %vm390_vm1, %v387_v28, %v389_v27  ;;  %v410_v42 = vsel %vm390_vm1, %v389_v27, %v387_v28  ;;  %v294_v27 = vld [vmem:[%s1227_s1 + $0x70] sm:$0xff]  ;;  %v974_v28 = vmov 0.0  }
  0xaa   : > { %v417_v51 = vadd.f32 %v394_v41, %v364_v45  ;;  %v418_v52 = vadd.f32 %v410_v42, %v365_v46  ;;  %v425_v55 = vmax.f32 %v372_v4, %v394_v41  ;;  %v426_v56 = vmax.f32 %v373_v48, %v410_v42  ;;  %701 = vmatprep.mubr.f32.mxu1 %v974_v28 }
  0xab   : > { %v602_v45 = vlaneseq }
  0xac   : > { %v438_v39 = vpop.permute.xlu1 %437  ;;  %v436_v40 = vpop.permute.xlu0 %435 }
  0xad   : > { %v446_v43 = vsel %vm443_vm2, %v436_v40, %v438_v39  ;;  %v462_v44 = vsel %vm443_vm2, %v438_v39, %v436_v40  ;;  %v603_v46 = vshrl.u32 %v602_v45, 7 }
  0xae   : > { %v468_v47 = vadd.f32 %v446_v43, %v415_v37  ;;  %v469_v5 = vadd.f32 %v462_v44, %v416_v38  ;;  %v476_v63 = vmax.f32 %v423_v49, %v446_v43  ;;  %v477_v7 = vmax.f32 %v424_v50, %v462_v44 }
  0xaf   : > { %v608_v4 = vsub.s32 1, %v603_v46 }
  0xb0   : > { %v442_v53 = vpop.permute.xlu1 %441  ;;  %v440_v54 = vpop.permute.xlu0 %439  ;;  %v484_v59 = vmul.f32 0.25, %v468_v47  ;;  %v485_v60 = vmul.f32 0.25, %v469_v5  ;;  %v604_v47 = vsub.s32 0, %v603_v46  ;;  %v304_v5 = vld [vmem:[%s1229_s3] sm:$0x3] }
  0xb1   : > { %v447_v57 = vsel %vm443_vm2, %v440_v54, %v442_v53  ;;  %v463_v58 = vsel %vm443_vm2, %v442_v53, %v440_v54  ;;  %v609_v49 = vrot.slane %v304_v5, %v608_v4 }
  0xb2   : > { %v470_v61 = vadd.f32 %v447_v57, %v417_v51  ;;  %v471_v62 = vadd.f32 %v463_v58, %v418_v52  ;;  %v478_v1 = vmax.f32 %v425_v55, %v447_v57  ;;  %v479_v6 = vmax.f32 %v426_v56, %v463_v58 }
  0xb3   : > { %v492_v9 = vadd.f32 %v484_v59, %v476_v63  ;;  %v493_v10 = vadd.f32 %v485_v60, %v477_v7  ;;  %v605_v48 = vrot.slane %v304_v5, %v604_v47 }
  0xb4   : > { %v486_v8 = vmul.f32 0.25, %v470_v61  ;;  %v487_v3 = vmul.f32 0.25, %v471_v62 }
  0xb6   : > { %v494_v11 = vadd.f32 %v486_v8, %v478_v1  ;;  %v495_v12 = vadd.f32 %v487_v3, %v479_v6 }
  0xb8   : > { %v907_v13 = vpack.c.bf16 %v495_v12, %v493_v10  ;;  %v909_v0 = vpack.c.bf16 %v494_v11, %v492_v9 }
  0xba   : > { %908 = vmatprep.subr.bf16.mxu0 %v907_v13 }
  0xbb   : > { %910 = vmatpush1.bf16.xpose.msra.mxu0 %v909_v0 }
  0xc2   : > { %561 = vmatmul.mubr.f32.vlgmr.msra.gmra.mrb[0].mxu0 %v280_v14 }
  0xc3   : > { %565 = vmatprep.mubr.f32.mxu0 %v283_v2 }
  0xc6   : > { %566 = vmatmul.mubr.f32.gmra.mrb[2].mxu0 %v282_v15 }
  0xc7   : > { %570 = vmatprep.mubr.f32.mxu0 %v285_v16 }
  0xca   : > { %571 = vmatmul.mubr.f32.gmra.mrb[4].mxu0 %v284_v17 }
  0xcb   : > { %575 = vmatprep.mubr.f32.mxu0 %v287_v18 }
  0xce   : > { %576 = vmatmul.mubr.f32.gmra.mrb[6].mxu0 %v286_v19 }
  0xcf   : > { %580 = vmatprep.mubr.f32.mxu0 %v289_v20 }
  0xd2   : > { %581 = vmatmul.mubr.f32.gmra.mrb[8].mxu0 %v288_v21 }
  0xd3   : > { %585 = vmatprep.mubr.f32.mxu0 %v291_v22 }
  0xd6   : > { %586 = vmatmul.mubr.f32.gmra.mrb[10].mxu0 %v290_v23 }
  0xd7   : > { %590 = vmatprep.mubr.f32.mxu0 %v293_v24 }
  0xda   : > { %591 = vmatmul.mubr.f32.gmra.mrb[12].mxu0 %v292_v25 }
  0xdb   : > { %595 = vmatprep.mubr.f32.mxu0 %v295_v26 }
  0xde   : > { %596 = vmatmul.mubr.f32.gmra.mrb[14].mxu0 %v294_v27 }
 0x195   : > { %v562_v29 = vpop.f32.mrb[0].mxu0 }
 0x196   : > { %v564_v30 = vpop.f32.mrb[1].mxu0  ;;  %891 = vmatmul.mubr.msk.f32.vlgmr.msra.gmra.mrb[0].mxu1 %vm612_vm3, %v562_v29 }
 0x197   : > { %707 = vmatprep.mubr.f32.mxu1 %v974_v28 }
 0x199   : > { %v567_v31 = vpop.f32.mrb[2].mxu0 }
 0x19a   : > { %v569_v32 = vpop.f32.mrb[3].mxu0  ;;  %892 = vmatmul.mubr.msk.f32.gmra.mrb[2].mxu1 %vm612_vm3, %v567_v31 }
 0x19b   : > { %713 = vmatprep.mubr.f32.mxu1 %v974_v28 }
 0x19d   : > { %v572_v33 = vpop.f32.mrb[4].mxu0 }
 0x19e   : > { %v574_v34 = vpop.f32.mrb[5].mxu0  ;;  %893 = vmatmul.mubr.msk.f32.gmra.mrb[4].mxu1 %vm612_vm3, %v572_v33 }
 0x19f   : > { %719 = vmatprep.mubr.f32.mxu1 %v974_v28 }
 0x1a1   : > { %v577_v35 = vpop.f32.mrb[6].mxu0 }
 0x1a2   : > { %v579_v36 = vpop.f32.mrb[7].mxu0  ;;  %894 = vmatmul.mubr.msk.f32.gmra.mrb[6].mxu1 %vm612_vm3, %v577_v35 }
 0x1a3   : > { %725 = vmatprep.mubr.f32.mxu1 %v974_v28 }
 0x1a5   : > { %v582_v37 = vpop.f32.mrb[8].mxu0 }
 0x1a6   : > { %v584_v38 = vpop.f32.mrb[9].mxu0  ;;  %895 = vmatmul.mubr.msk.f32.gmra.mrb[8].mxu1 %vm612_vm3, %v582_v37 }
 0x1a7   : > { %731 = vmatprep.mubr.f32.mxu1 %v974_v28 }
 0x1a9   : > { %v587_v39 = vpop.f32.mrb[10].mxu0 }
 0x1aa   : > { %v589_v40 = vpop.f32.mrb[11].mxu0  ;;  %896 = vmatmul.mubr.msk.f32.gmra.mrb[10].mxu1 %vm612_vm3, %v587_v39 }
 0x1ab   : > { %737 = vmatprep.mubr.f32.mxu1 %v974_v28 }
 0x1ad   : > { %v592_v41 = vpop.f32.mrb[12].mxu0 }
 0x1ae   : > { %v594_v42 = vpop.f32.mrb[13].mxu0  ;;  %897 = vmatmul.mubr.msk.f32.gmra.mrb[12].mxu1 %vm612_vm3, %v592_v41 }
 0x1af   : > { %743 = vmatprep.mubr.f32.mxu1 %v974_v28 }
 0x1b1   : > { %v597_v43 = vpop.f32.mrb[14].mxu0 }
 0x1b2   : > { %v599_v44 = vpop.f32.mrb[15].mxu0  ;;  %898 = vmatmul.mubr.msk.f32.gmra.mrb[14].mxu1 %vm612_vm3, %v597_v43 }
 0x269   : > { %v703_v50 = vpop.f32.mrb[0].mxu1 }
 0x26a   : > { %v704_v51 = vadd.f32 %v703_v50, %v605_v48  ;;  %v705_v52 = vpop.f32.mrb[1].mxu1 }
 0x26b   : > { %v706_v53 = vadd.f32 %v705_v52, %v609_v49 }
 0x26c   : > { %750 = vst [vmem:[%s1191_s9] sm:$0xff] %v704_v51 }
 0x26d   : > { %752 = vst.msk [vmem:[%s1191_s9 + $0x8] sm:$0xff] %vm751_vm4, %v706_v53  ;;  %v709_v54 = vpop.f32.mrb[2].mxu1 }
 0x26e   : > { %v710_v55 = vadd.f32 %v709_v54, %v605_v48  ;;  %v711_v56 = vpop.f32.mrb[3].mxu1 }
 0x26f   : > { %v712_v57 = vadd.f32 %v711_v56, %v609_v49 }
 0x270   : > { %753 = vst [vmem:[%s1191_s9 + $0x10] sm:$0xff] %v710_v55 }
 0x271   : > { %754 = vst.msk [vmem:[%s1191_s9 + $0x18] sm:$0xff] %vm751_vm4, %v712_v57  ;;  %v715_v58 = vpop.f32.mrb[4].mxu1 }
 0x272   : > { %v716_v59 = vadd.f32 %v715_v58, %v605_v48  ;;  %v717_v60 = vpop.f32.mrb[5].mxu1 }
 0x273   : > { %v718_v61 = vadd.f32 %v717_v60, %v609_v49 }
 0x274   : > { %755 = vst [vmem:[%s1191_s9 + $0x20] sm:$0xff] %v716_v59 }
 0x275   : > { %756 = vst.msk [vmem:[%s1191_s9 + $0x28] sm:$0xff] %vm751_vm4, %v718_v61  ;;  %v721_v62 = vpop.f32.mrb[6].mxu1 }
 0x276   : > { %v722_v63 = vadd.f32 %v721_v62, %v605_v48  ;;  %v723_v7 = vpop.f32.mrb[7].mxu1 }
 0x277   : > { %v724_v1 = vadd.f32 %v723_v7, %v609_v49 }
 0x278   : > { %757 = vst [vmem:[%s1191_s9 + $0x30] sm:$0xff] %v722_v63 }
 0x279   : > { %758 = vst.msk [vmem:[%s1191_s9 + $0x38] sm:$0xff] %vm751_vm4, %v724_v1  ;;  %v727_v6 = vpop.f32.mrb[8].mxu1 }
 0x27a   : > { %v728_v8 = vadd.f32 %v727_v6, %v605_v48  ;;  %v729_v3 = vpop.f32.mrb[9].mxu1 }
 0x27b   : > { %v730_v9 = vadd.f32 %v729_v3, %v609_v49 }
 0x27c   : > { %759 = vst [vmem:[%s1191_s9 + $0x40] sm:$0xff] %v728_v8 }
 0x27d   : > { %760 = vst.msk [vmem:[%s1191_s9 + $0x48] sm:$0xff] %vm751_vm4, %v730_v9  ;;  %v733_v10 = vpop.f32.mrb[10].mxu1 }
 0x27e   : > { %v734_v11 = vadd.f32 %v733_v10, %v605_v48  ;;  %v735_v12 = vpop.f32.mrb[11].mxu1 }
 0x27f   : > { %v736_v13 = vadd.f32 %v735_v12, %v609_v49 }
 0x280   : > { %761 = vst [vmem:[%s1191_s9 + $0x50] sm:$0xff] %v734_v11 }
 0x281   : > { %762 = vst.msk [vmem:[%s1191_s9 + $0x58] sm:$0xff] %vm751_vm4, %v736_v13  ;;  %v739_v0 = vpop.f32.mrb[12].mxu1 }
 0x282   : > { %v740_v14 = vadd.f32 %v739_v0, %v605_v48  ;;  %v741_v2 = vpop.f32.mrb[13].mxu1 }
 0x283   : > { %v742_v15 = vadd.f32 %v741_v2, %v609_v49 }
 0x284   : > { %763 = vst [vmem:[%s1191_s9 + $0x60] sm:$0xff] %v740_v14 }
 0x285   : > { %764 = vst.msk [vmem:[%s1191_s9 + $0x68] sm:$0xff] %vm751_vm4, %v742_v15  ;;  %v745_v16 = vpop.f32.mrb[14].mxu1 }
 0x286   : > { %v746_v17 = vadd.f32 %v745_v16, %v605_v48  ;;  %v747_v18 = vpop.f32.mrb[15].mxu1 }
 0x287   : > { %v748_v19 = vadd.f32 %v747_v18, %v609_v49 }
 0x288   : > { %765 = vst [vmem:[%s1191_s9 + $0x70] sm:$0xff] %v746_v17 }
 0x289   : > { %766 = vst.msk [vmem:[%s1191_s9 + $0x78] sm:$0xff] %vm751_vm4, %v748_v19 }
 0x28a PF: > { %s14_s17 = sadd.s32 1, %s969_s17   ;;  %s1231_s15 = smov %s965_s16 }
 0x28b   : > { %p11_p5 = scmp.ge.s32.totalorder %s14_s17, 4   ;;  %s1232_s16 = smov %s1234_s18 }
 0x28d   :  { %13 = sbr.rel (!%p11_p5) target bundleno = 2 (0x2), region = 69 }

</bundles_post_ra>
